<compile_context>
chip_gen: v7x
topology: tpu7x:2x2x1
jax: 0.10.0
libtpu: 0.0.40
codegen_flags: <defaults>
</compile_context>

<pallas_src>
from functools import partial

import jax
import jax.numpy as jnp
from jax.experimental import pallas as pl
from jax.experimental.pallas import tpu as pltpu

N_STATES = 336
N_ACTIONS = 72
H1, H2 = 512, 256
K_PAD = 384            # 336 padded up to a multiple of 128
N_PAD = 128            # 72 padded up to a full lane tile
B_TOTAL = H1 + H2 + N_PAD  # 896: packed bias vector width


def _round_up(n, m):
    return ((n + m - 1) // m) * m


def dqn_kernel(x_ref, w1_ref, w2_ref, w3_ref, b_ref, o_ref):
    # Packed biases: [b1 | b2 | b3_padded] = (1, 512 + 256 + 128), f32.
    b1 = b_ref[:, 0:H1]
    b2 = b_ref[:, H1:H1 + H2]
    b3 = b_ref[:, H1 + H2:B_TOTAL]

    # Layer 1: (TB, 384)bf16 @ (384, 512)bf16 -> f32 acc; bias + ReLU in f32.
    h1 = jnp.dot(x_ref[...], w1_ref[...], preferred_element_type=jnp.float32)
    h1 = jnp.maximum(h1 + b1, 0.0)

    # Layer 2: (TB, 512) @ (512, 256)
    h2 = jnp.dot(h1.astype(w2_ref.dtype), w2_ref[...],
                 preferred_element_type=jnp.float32)
    h2 = jnp.maximum(h2 + b2, 0.0)

    # Layer 3: (TB, 256) @ (256, 128)  (output lanes padded to 128)
    out = jnp.dot(h2.astype(w3_ref.dtype), w3_ref[...],
                  preferred_element_type=jnp.float32)
    o_ref[...] = (out + b3).astype(o_ref.dtype)


def prepare_params(params):
    """One-time pad/cast of the f32 params into kernel layout (call once, reuse).

    Returns (w1p, w2p, w3p, b_all) with zero-padded bf16 weights and the three
    biases concatenated into a single (1, 896) f32 row (one DMA / BlockSpec).
    """
    w1, b1, w2, b2, w3, b3 = params
    w1p = jnp.zeros((K_PAD, H1), jnp.bfloat16).at[:N_STATES, :].set(
        w1.astype(jnp.bfloat16))
    w2p = w2.astype(jnp.bfloat16)
    w3p = jnp.zeros((H2, N_PAD), jnp.bfloat16).at[:, :N_ACTIONS].set(
        w3.astype(jnp.bfloat16))
    b3p = jnp.zeros((1, N_PAD), jnp.float32).at[:, :N_ACTIONS].set(b3)
    b_all = jnp.concatenate([b1, b2, b3p], axis=1)  # (1, 896) f32
    return w1p, w2p, w3p, b_all


@partial(jax.jit, static_argnames=("block_b",))
def dqn_forward(x, prepared, *, block_b=1024):
    """x: (B, 336) f32.  prepared: output of prepare_params (padded bf16 weights)."""
    w1p, w2p, w3p, b_all = prepared
    B = x.shape[0]

    # --- batch tiling -------------------------------------------------------
    # bf16 sublane tile is (16, 128): pad batch to a multiple of 16 and keep
    # tb a multiple of 16 (256 when tiling) so x loads stay unmasked.
    block_b = max(256, _round_up(block_b, 256))
    Bp = _round_up(max(B, 16), 16)
    if Bp <= block_b:
        tb = Bp                                 # single grid step
    else:
        # >= 2 grid steps so v7x megacore can shard; tb a multiple of 256.
        tb = min(block_b, _round_up(pl.cdiv(Bp, 2), 256))
        Bp = _round_up(Bp, tb)
    grid_b = Bp // tb

    # --- per-call activation pad + cast (exact, fuses under jit) ------------
    xp = jnp.zeros((Bp, K_PAD), jnp.bfloat16)
    xp = xp.at[:B, :N_STATES].set(x.astype(jnp.bfloat16))

    out = pl.pallas_call(
        dqn_kernel,
        out_shape=jax.ShapeDtypeStruct((Bp, N_PAD), jnp.float32),
        grid_spec=pltpu.PrefetchScalarGridSpec(
            num_scalar_prefetch=0,
            grid=(grid_b,),
            in_specs=[
                pl.BlockSpec((tb, K_PAD), lambda i: (i, 0)),    # x tile streams
                pl.BlockSpec((K_PAD, H1), lambda i: (0, 0)),    # weights resident
                pl.BlockSpec((H1, H2), lambda i: (0, 0)),
                pl.BlockSpec((H2, N_PAD), lambda i: (0, 0)),
                pl.BlockSpec((1, B_TOTAL), lambda i: (0, 0)),   # packed biases
            ],
            out_specs=pl.BlockSpec((tb, N_PAD), lambda i: (i, 0)),
        ),
        compiler_params=pltpu.CompilerParams(
            dimension_semantics=("parallel",),
            # Explicit scoped-VMEM limit: tb=1024 footprint (~8-10 MiB) would
            # not fit v5e's 16 MiB default; 32 MiB is safe on v5e/v6e/v7x.
            vmem_limit_bytes=32 * 1024 * 1024,
        ),
    )(xp, w1p, w2p, w3p, b_all)

    # Padded batch rows hold ReLU(bias) garbage; always crop to [:B, :72].
    return out[:B, :N_ACTIONS]


def init_params(key, n_states=N_STATES, n_actions=N_ACTIONS):
    """PyTorch nn.Linear-style init: U(-1/sqrt(fan_in), +1/sqrt(fan_in))."""
    dims = [(n_states, H1), (H1, H2), (H2, n_actions)]
    params = []
    for fan_in, fan_out in dims:
        key, kw, kb = jax.random.split(key, 3)
        bound = 1.0 / jnp.sqrt(jnp.float32(fan_in))
        w = jax.random.uniform(kw, (fan_in, fan_out), jnp.float32, -bound, bound)
        b = jax.random.uniform(kb, (1, fan_out), jnp.float32, -bound, bound)
        params.extend([w, b])
    return tuple(params)


def dqn_reference_bf16(x, params):
    """Reference applying the same bf16-input / f32-accumulate quantization."""
    w1, b1, w2, b2, w3, b3 = params
    xb = x.astype(jnp.bfloat16)
    w1b, w2b, w3b = (w.astype(jnp.bfloat16) for w in (w1, w2, w3))
    h1 = jnp.maximum(
        jnp.dot(xb, w1b, preferred_element_type=jnp.float32) + b1, 0.0)
    h2 = jnp.maximum(
        jnp.dot(h1.astype(jnp.bfloat16), w2b,
                preferred_element_type=jnp.float32) + b2, 0.0)
    return jnp.dot(h2.astype(jnp.bfloat16), w3b,
                   preferred_element_type=jnp.float32) + b3


def dqn_reference_f32(x, params):
    w1, b1, w2, b2, w3, b3 = params
    h1 = jnp.maximum(x @ w1 + b1, 0.0)
    h2 = jnp.maximum(h1 @ w2 + b2, 0.0)
    return h2 @ w3 + b3


if __name__ == "__main__":
    key = jax.random.PRNGKey(0)
    k_params, k_x, k_x2 = jax.random.split(key, 3)

    params = init_params(k_params)
    prepared = prepare_params(params)          # one-time weight pad/cast

    # --- small-batch (online inference) path: single grid step -------------
    batch = 4
    x = jax.random.normal(k_x, (batch, N_STATES), jnp.float32)
    out = jax.block_until_ready(dqn_forward(x, prepared))

    ref_q = dqn_reference_bf16(x, params)      # same bf16 quantization as kernel
    ref_f = dqn_reference_f32(x, params)       # pure-f32 sanity check

    assert out.shape == (batch, N_ACTIONS), out.shape
    assert jnp.allclose(out, ref_q, atol=1e-2, rtol=1e-2), "mismatch vs bf16 reference"
    assert jnp.allclose(out, ref_f, atol=5e-2, rtol=5e-2), "mismatch vs f32 reference"

    # --- large-batch path: exercises multi-step grid (>=2 steps, megacore) --
    batch2 = 2000
    x2 = jax.random.normal(k_x2, (batch2, N_STATES), jnp.float32)
    out2 = jax.block_until_ready(dqn_forward(x2, prepared))
    ref2 = dqn_reference_bf16(x2, params)
    assert out2.shape == (batch2, N_ACTIONS), out2.shape
    assert jnp.allclose(out2, ref2, atol=1e-2, rtol=1e-2), "mismatch (large batch)"

    print("KERNEL_OK")
</pallas_src>

<mosaic_0001>
module attributes {stable_mosaic.version = 11 : i64} {
  func.func @dqn_kernel(%arg0: i32, %arg1: memref<16x384xbf16, #tpu.memory_space<vmem>>, %arg2: memref<384x512xbf16, #tpu.memory_space<vmem>>, %arg3: memref<512x256xbf16, #tpu.memory_space<vmem>>, %arg4: memref<256x128xbf16, #tpu.memory_space<vmem>>, %arg5: memref<1x896xf32, #tpu.memory_space<vmem>>, %arg6: memref<16x128xf32, #tpu.memory_space<vmem>>) attributes {dimension_semantics = [#tpu.dimension_semantics<parallel>], iteration_bounds = array<i64: 1>, scalar_prefetch = 0 : i64, scratch_operands = 0 : i64, tpu.core_type = #tpu.core_type<tc>, window_params = [{transform_indices = @transform_0, window_bounds = array<i64: 16, 384>}, {pipeline_mode = #tpu.pipeline_mode<synchronous>, transform_indices = @transform_1, window_bounds = array<i64: 384, 512>}, {pipeline_mode = #tpu.pipeline_mode<synchronous>, transform_indices = @transform_2, window_bounds = array<i64: 512, 256>}, {pipeline_mode = #tpu.pipeline_mode<synchronous>, transform_indices = @transform_3, window_bounds = array<i64: 256, 128>}, {pipeline_mode = #tpu.pipeline_mode<synchronous>, transform_indices = @transform_4, window_bounds = array<i64: 1, 896>}, {transform_indices = @transform_5, window_bounds = array<i64: 16, 128>}]} {
    %c0 = arith.constant 0 : index
    %c0_0 = arith.constant 0 : index
    %0 = vector.load %arg5[%c0, %c0_0] : memref<1x896xf32, #tpu.memory_space<vmem>>, vector<1x512xf32>
    %c0_1 = arith.constant 0 : index
    %c512 = arith.constant 512 : index
    %1 = vector.load %arg5[%c0_1, %c512] : memref<1x896xf32, #tpu.memory_space<vmem>>, vector<1x256xf32>
    %c0_2 = arith.constant 0 : index
    %c768 = arith.constant 768 : index
    %2 = vector.load %arg5[%c0_2, %c768] : memref<1x896xf32, #tpu.memory_space<vmem>>, vector<1x128xf32>
    %c0_3 = arith.constant 0 : index
    %c0_4 = arith.constant 0 : index
    %3 = vector.load %arg1[%c0_3, %c0_4] : memref<16x384xbf16, #tpu.memory_space<vmem>>, vector<16x384xbf16>
    %c0_5 = arith.constant 0 : index
    %c0_6 = arith.constant 0 : index
    %4 = vector.load %arg2[%c0_5, %c0_6] : memref<384x512xbf16, #tpu.memory_space<vmem>>, vector<384x512xbf16>
    %cst = arith.constant dense<0.000000e+00> : vector<16x512xf32>
    %5 = tpu.matmul %3, %4, %cst {dimension_numbers = #tpu.dot_dimension_numbers<[1], [0], [0], [1], [0, 0, 1, 1], [], []>} : vector<16x384xbf16>, vector<384x512xbf16>, vector<16x512xf32> -> vector<16x512xf32>
    %6 = vector.broadcast %0 : vector<1x512xf32> to vector<16x512xf32>
    %7 = arith.addf %5, %6 : vector<16x512xf32>
    %cst_7 = arith.constant 0.000000e+00 : f32
    %8 = vector.broadcast %cst_7 : f32 to vector<16x512xf32>
    %9 = arith.maximumf %7, %8 : vector<16x512xf32>
    %10 = arith.truncf %9 : vector<16x512xf32> to vector<16x512xbf16>
    %c0_8 = arith.constant 0 : index
    %c0_9 = arith.constant 0 : index
    %11 = vector.load %arg3[%c0_8, %c0_9] : memref<512x256xbf16, #tpu.memory_space<vmem>>, vector<512x256xbf16>
    %cst_10 = arith.constant dense<0.000000e+00> : vector<16x256xf32>
    %12 = tpu.matmul %10, %11, %cst_10 {dimension_numbers = #tpu.dot_dimension_numbers<[1], [0], [0], [1], [0, 0, 1, 1], [], []>} : vector<16x512xbf16>, vector<512x256xbf16>, vector<16x256xf32> -> vector<16x256xf32>
    %13 = vector.broadcast %1 : vector<1x256xf32> to vector<16x256xf32>
    %14 = arith.addf %12, %13 : vector<16x256xf32>
    %cst_11 = arith.constant 0.000000e+00 : f32
    %15 = vector.broadcast %cst_11 : f32 to vector<16x256xf32>
    %16 = arith.maximumf %14, %15 : vector<16x256xf32>
    %17 = arith.truncf %16 : vector<16x256xf32> to vector<16x256xbf16>
    %c0_12 = arith.constant 0 : index
    %c0_13 = arith.constant 0 : index
    %18 = vector.load %arg4[%c0_12, %c0_13] : memref<256x128xbf16, #tpu.memory_space<vmem>>, vector<256x128xbf16>
    %cst_14 = arith.constant dense<0.000000e+00> : vector<16x128xf32>
    %19 = tpu.matmul %17, %18, %cst_14 {dimension_numbers = #tpu.dot_dimension_numbers<[1], [0], [0], [1], [0, 0, 1, 1], [], []>} : vector<16x256xbf16>, vector<256x128xbf16>, vector<16x128xf32> -> vector<16x128xf32>
    %20 = vector.broadcast %2 : vector<1x128xf32> to vector<16x128xf32>
    %21 = arith.addf %19, %20 : vector<16x128xf32>
    %c0_15 = arith.constant 0 : index
    %c0_16 = arith.constant 0 : index
    %22 = vector.load %arg6[%c0_15, %c0_16] : memref<16x128xf32, #tpu.memory_space<vmem>>, vector<16x128xf32>
    tpu.vector_store %arg6[%c0_15, %c0_16], %21 {strides = array<i32>} : memref<16x128xf32, #tpu.memory_space<vmem>>, vector<16x128xf32>,
    return
  }
  func.func @transform_0(%arg0: i32) -> (i32, i32) {
    %c0_i32 = arith.constant 0 : i32
    %c0_i32_0 = arith.constant 0 : i32
    return %arg0, %c0_i32 : i32, i32
  }
  func.func @transform_1(%arg0: i32) -> (i32, i32) {
    %c0_i32 = arith.constant 0 : i32
    %c0_i32_0 = arith.constant 0 : i32
    %c0_i32_1 = arith.constant 0 : i32
    return %c0_i32, %c0_i32_0 : i32, i32
  }
  func.func @transform_2(%arg0: i32) -> (i32, i32) {
    %c0_i32 = arith.constant 0 : i32
    %c0_i32_0 = arith.constant 0 : i32
    %c0_i32_1 = arith.constant 0 : i32
    return %c0_i32, %c0_i32_0 : i32, i32
  }
  func.func @transform_3(%arg0: i32) -> (i32, i32) {
    %c0_i32 = arith.constant 0 : i32
    %c0_i32_0 = arith.constant 0 : i32
    %c0_i32_1 = arith.constant 0 : i32
    return %c0_i32, %c0_i32_0 : i32, i32
  }
  func.func @transform_4(%arg0: i32) -> (i32, i32) {
    %c0_i32 = arith.constant 0 : i32
    %c0_i32_0 = arith.constant 0 : i32
    %c0_i32_1 = arith.constant 0 : i32
    return %c0_i32, %c0_i32_0 : i32, i32
  }
  func.func @transform_5(%arg0: i32) -> (i32, i32) {
    %c0_i32 = arith.constant 0 : i32
    %c0_i32_0 = arith.constant 0 : i32
    return %arg0, %c0_i32 : i32, i32
  }
}

</mosaic_0001>

<bundles_post_ra>
// kernel: dqn_forward.1
= control target key start
LH: loop header
LB: loop body
LE: loop exit
PB: predicated region body
PF: predicated region fallthrough
CT: control target
= control target key end

     0   :  { %10 = vsyncpa [#allocation3], 0  ;;  %s2232_s0 = inlined_call_operand.vmem [shape: bf16[16,384], index: 0, kind: input, shape index: {}]   ;;  %s2233_s1 = inlined_call_operand.hbm [shape: bf16[384,512], index: 1, kind: input, shape index: {}]   ;;  %s2234_s2 = inlined_call_operand.hbm [shape: bf16[512,256], index: 2, kind: input, shape index: {}]   ;;  %s2235_s3 = inlined_call_operand.hbm [shape: bf16[256,128], index: 3, kind: input, shape index: {}]   ;;  %s2236_s4 = inlined_call_operand.vmem [shape: f32[1,896], index: 4, kind: input, shape index: {}]   ;;  %s2237_s5 = inlined_call_operand.vmem [shape: f32[16,128], index: 5, kind: output, shape index: {}]  }
   0x1   :  { %11 = vsyncpa [#allocation5], 0  ;;  %s2102_s18 = smov [#allocation4]   ;;  %s2032_s22 = scalar_lea.hbm %s2234_s2, 8192 }
   0x2   :  { %s31_s19 = sshll.u32 %s2102_s18, 4  ;;  %p2033_p0 = scmp.ne.s32.totalorder %s2234_s2, %s2032_s22  ;;  %s32_s19 = int_to_ptr.vmem [resolvable:$true] %s31_s19 }
   0x3   :  { %p2036_p1 = scmp.lt.u32.totalorder %s2032_s22, %s2234_s2 }
   0x5   :  { %p2038_p2 = pnand %p2036_p1, %p2033_p0 }
   0x7   :  { %2041 = shalt.err (!%p2038_p2)
}
   0x8   :  { %s2042_s27 = scalar_lea.vmem %s32_s19, 8192  ;;  %p2047_p4 = scmp.lt.s32.totalorder %s32_s19, %s32_s19 }
   0x9   :  { %p2043_p3 = scmp.ne.s32.totalorder %s32_s19, %s2042_s27  ;;  %p2048_p5 = scmp.lt.s32.totalorder %s2042_s27, %s2042_s27 }
   0xb   :  { %p2049_p6 = por %p2048_p5, %p2047_p4 }
   0xd   :  { %p2050_p7 = pnand %p2049_p6, %p2043_p3 }
   0xf   :  { %2053 = shalt.err (!%p2050_p7)
}
  0x10   :  { %s2103_s28 = smov 128   ;;  %s2104_s29 = smov 8  }
  0x11   :  { %37 = dma.hbm_to_vmem [thread:$0]  %s2234_s2, 8192, %s32_s19, [#allocation5], %s2103_s28, %s2103_s28, %s2104_s29  }
  0x12   :  { %s2105_s7 = smov [#allocation2]   ;;  %s2054_s11 = scalar_lea.hbm %s2233_s1, 12288 }
  0x13   :  { %s19_s8 = sshll.u32 %s2105_s7, 4  ;;  %p2055_p8 = scmp.ne.s32.totalorder %s2233_s1, %s2054_s11  ;;  %s20_s8 = int_to_ptr.vmem [resolvable:$true] %s19_s8 }
  0x14   :  { %p2058_p9 = scmp.lt.u32.totalorder %s2054_s11, %s2233_s1 }
  0x16   :  { %p2060_p10 = pnand %p2058_p9, %p2055_p8 }
  0x18   :  { %2063 = shalt.err (!%p2060_p10)
}
  0x19   :  { %s2064_s16 = scalar_lea.vmem %s20_s8, 12288  ;;  %p2069_p12 = scmp.lt.s32.totalorder %s20_s8, %s20_s8 }
  0x1a   :  { %p2065_p11 = scmp.ne.s32.totalorder %s20_s8, %s2064_s16  ;;  %p2070_p13 = scmp.lt.s32.totalorder %s2064_s16, %s2064_s16 }
  0x1c   :  { %p2071_p0 = por %p2070_p13, %p2069_p12 }
  0x1e   :  { %p2072_p1 = pnand %p2071_p0, %p2065_p11 }
  0x20   :  { %2075 = shalt.err (!%p2072_p1)
}
  0x21   :  { %s2106_s2 = smov 256   ;;  %s2107_s17 = smov 16  }
  0x22   :  { %25 = dma.hbm_to_vmem [thread:$0]  %s2233_s1, 12288, %s20_s8, [#allocation3], %s2106_s2, %s2106_s2, %s2107_s17  }
  0x23   :  { %s2108_s20 = smov [#allocation6]   ;;  %s2076_s24 = scalar_lea.hbm %s2235_s3, 2048 }
  0x24   :  { %s43_s21 = sshll.u32 %s2108_s20, 4  ;;  %p2077_p2 = scmp.ne.s32.totalorder %s2235_s3, %s2076_s24  ;;  %s44_s21 = int_to_ptr.vmem [resolvable:$true] %s43_s21 }
  0x25   :  { %p2080_p3 = scmp.lt.u32.totalorder %s2076_s24, %s2235_s3 }
  0x27   :  { %p2082_p4 = pnand %p2080_p3, %p2077_p2 }
  0x29   :  { %2085 = shalt.err (!%p2082_p4)
}
  0x2a   :  { %s2086_s29 = scalar_lea.vmem %s44_s21, 2048  ;;  %p2091_p6 = scmp.lt.s32.totalorder %s44_s21, %s44_s21 }
  0x2b   :  { %p2087_p5 = scmp.ne.s32.totalorder %s44_s21, %s2086_s29  ;;  %p2092_p7 = scmp.lt.s32.totalorder %s2086_s29, %s2086_s29 }
  0x2d   :  { %p2093_p8 = por %p2092_p7, %p2091_p6 }
  0x2f   :  { %p2094_p9 = pnand %p2093_p8, %p2087_p5 }
  0x31   :  { %2097 = shalt.err (!%p2094_p9)
}
  0x32   :  { %s2109_s1 = smov 64   ;;  %s2110_s30 = smov 4  }
  0x33   :  { %49 = dma.hbm_to_vmem [thread:$0]  %s2235_s3, 2048, %s44_s21, [#allocation5], %s2109_s1, %s2109_s1, %s2110_s30  }
  0x34   :  { %2098 = dma.done.wait [#allocation3], 12288  }
  0x35   :  { %2099 = vsyncadd [#allocation3], 4294955008 }
  0x36   :  { %2100 = dma.done.wait [#allocation5], 10240  }
  0x37   :  { %2101 = vsyncadd [#allocation5], 4294957056  ;;  %v2111_v0 = vmov 0   ;;  %v1772_v1 = vld [vmem:[#allocation2 + $0x4] ss:$16 sps:$4 sm:$0xff]  }
  0x38   :  { %757 = vmatprep.mubr.bf16.mxu0 %v2111_v0  ;;  %v1774_v2 = vld [vmem:[#allocation2] ss:$16 sps:$4 sm:$0xff]   ;;  %682 = vmatprep.subr.bf16.mxu1 %v1772_v1  ;;  %v1775_v3 = vld [vmem:[#allocation2 + $0x24] ss:$16 sps:$4 sm:$0xff]   ;;  %v1849_v51 = vld [vmem:[#allocation2 + $0xc] ss:$16 sps:$4 sm:$0xff]  }
  0x39   :  { %683 = vmatpush1.bf16.msra.mxu1 %v1774_v2  ;;  %v1777_v4 = vld [vmem:[#allocation2 + $0x20] ss:$16 sps:$4 sm:$0xff]   ;;  %v1778_v5 = vld [vmem:[#allocation2 + $0x44] ss:$16 sps:$4 sm:$0xff]   ;;  %v1847_v53 = vld [vmem:[#allocation2 + $0x8] ss:$16 sps:$4 sm:$0xff]  }
  0x3a   :  { %684 = vmatprep.subr.bf16.mxu1 %v1775_v3  ;;  %v1780_v6 = vld [vmem:[#allocation2 + $0x40] ss:$16 sps:$4 sm:$0xff]   ;;  %v1781_v7 = vld [vmem:[#allocation2 + $0x64] ss:$16 sps:$4 sm:$0xff]   ;;  %v1853_v54 = vld [vmem:[#allocation2 + $0x2c] ss:$16 sps:$4 sm:$0xff]  }
  0x3b   :  { %v1783_v8 = vld [vmem:[#allocation2 + $0x60] ss:$16 sps:$4 sm:$0xff]   ;;  %v1784_v9 = vld [vmem:[#allocation2 + $0x84] ss:$16 sps:$4 sm:$0xff]   ;;  %v1851_v55 = vld [vmem:[#allocation2 + $0x28] ss:$16 sps:$4 sm:$0xff]  }
  0x3c   :  { %v1799_v10 = vld [vmem:[#allocation2 + $0x204] ss:$16 sps:$4 sm:$0xff]   ;;  %v1801_v11 = vld [vmem:[#allocation2 + $0x200] ss:$16 sps:$4 sm:$0xff]   ;;  %v1856_v58 = vld [vmem:[#allocation2 + $0x4c] ss:$16 sps:$4 sm:$0xff]  }
  0x3d   :  { %685 = vmatpush1.bf16.msra.mxu1 %v1777_v4  ;;  %v1786_v12 = vld [vmem:[#allocation2 + $0x80] ss:$16 sps:$4 sm:$0xff]   ;;  %725 = vmatprep.subr.bf16.mxu0 %v1799_v10  ;;  %v1805_v13 = vld [vmem:[#allocation2 + $0x224] ss:$16 sps:$4 sm:$0xff]   ;;  %v1854_v61 = vld [vmem:[#allocation2 + $0x48] ss:$16 sps:$4 sm:$0xff]  }
  0x3e   :  { %686 = vmatprep.subr.bf16.mxu1 %v1778_v5  ;;  %726 = vmatpush1.bf16.msra.mxu0 %v1801_v11  ;;  %v1807_v14 = vld [vmem:[#allocation2 + $0x220] ss:$16 sps:$4 sm:$0xff]   ;;  %v1787_v15 = vld [vmem:[#allocation2 + $0xa4] ss:$16 sps:$4 sm:$0xff]   ;;  %v1859_v63 = vld [vmem:[#allocation2 + $0x6c] ss:$16 sps:$4 sm:$0xff]  }
  0x3f   :  { %727 = vmatprep.subr.bf16.mxu0 %v1805_v13  ;;  %v1789_v16 = vld [vmem:[#allocation2 + $0xa0] ss:$16 sps:$4 sm:$0xff]   ;;  %v1811_v17 = vld [vmem:[#allocation2 + $0x244] ss:$16 sps:$4 sm:$0xff]   ;;  %v1857_v2 = vld [vmem:[#allocation2 + $0x68] ss:$16 sps:$4 sm:$0xff]  }
  0x40   :  { %v1790_v18 = vld [vmem:[#allocation2 + $0xc4] ss:$16 sps:$4 sm:$0xff]   ;;  %v1813_v19 = vld [vmem:[#allocation2 + $0x240] ss:$16 sps:$4 sm:$0xff]   ;;  %v1862_v4 = vld [vmem:[#allocation2 + $0x8c] ss:$16 sps:$4 sm:$0xff]  }
  0x41   :  { %687 = vmatpush1.bf16.msra.mxu1 %v1780_v6  ;;  %v1817_v20 = vld [vmem:[#allocation2 + $0x264] ss:$16 sps:$4 sm:$0xff]   ;;  %v1792_v21 = vld [vmem:[#allocation2 + $0xc0] ss:$16 sps:$4 sm:$0xff]   ;;  %v1860_v6 = vld [vmem:[#allocation2 + $0x88] ss:$16 sps:$4 sm:$0xff]  }
  0x42   :  { %688 = vmatprep.subr.bf16.mxu1 %v1781_v7  ;;  %728 = vmatpush1.bf16.msra.mxu0 %v1807_v14  ;;  %v1793_v22 = vld [vmem:[#allocation2 + $0xe4] ss:$16 sps:$4 sm:$0xff]   ;;  %v1819_v23 = vld [vmem:[#allocation2 + $0x260] ss:$16 sps:$4 sm:$0xff]   ;;  %v1863_v10 = vld [vmem:[#allocation2 + $0xa8] ss:$16 sps:$4 sm:$0xff]  }
  0x43   :  { %729 = vmatprep.subr.bf16.mxu0 %v1811_v17  ;;  %v1823_v24 = vld [vmem:[#allocation2 + $0x284] ss:$16 sps:$4 sm:$0xff]   ;;  %v1795_v25 = vld [vmem:[#allocation2 + $0xe0] ss:$16 sps:$4 sm:$0xff]   ;;  %v1868_v11 = vld [vmem:[#allocation2 + $0xcc] ss:$16 sps:$4 sm:$0xff]  }
  0x44   :  { %v1796_v26 = vld [vmem:[#allocation2 + $0x104] ss:$16 sps:$4 sm:$0xff]   ;;  %v1825_v27 = vld [vmem:[#allocation2 + $0x280] ss:$16 sps:$4 sm:$0xff]   ;;  %v1866_v14 = vld [vmem:[#allocation2 + $0xc8] ss:$16 sps:$4 sm:$0xff]  }
  0x45   :  { %689 = vmatpush1.bf16.msra.mxu1 %v1783_v8  ;;  %v1829_v28 = vld [vmem:[#allocation2 + $0x2a4] ss:$16 sps:$4 sm:$0xff]   ;;  %v1798_v29 = vld [vmem:[#allocation2 + $0x100] ss:$16 sps:$4 sm:$0xff]   ;;  %v1865_v8 = vld [vmem:[#allocation2 + $0xac] ss:$16 sps:$4 sm:$0xff]  }
  0x46   :  { %690 = vmatprep.subr.bf16.mxu1 %v1784_v9  ;;  %730 = vmatpush1.bf16.msra.mxu0 %v1813_v19  ;;  %v1802_v30 = vld [vmem:[#allocation2 + $0x124] ss:$16 sps:$4 sm:$0xff]   ;;  %v1831_v31 = vld [vmem:[#allocation2 + $0x2a0] ss:$16 sps:$4 sm:$0xff]  }
  0x47   :  { %731 = vmatprep.subr.bf16.mxu0 %v1817_v20  ;;  %v1835_v32 = vld [vmem:[#allocation2 + $0x2c4] ss:$16 sps:$4 sm:$0xff]   ;;  %v1804_v34 = vld [vmem:[#allocation2 + $0x120] ss:$16 sps:$4 sm:$0xff]   ;;  %v1874_v20 = vld [vmem:[#allocation2 + $0x10c] ss:$16 sps:$4 sm:$0xff]  }
  0x48   :  { %v1845_v33 = vld [vmem:[%s2232_s0 + $0x4] ss:$12 sps:$4 sm:$0xff]   ;;  %v2185_v41 = vld [vmem:[%s2232_s0 + $0x8] ss:$12 sps:$4 sm:$0xff]   ;;  %v2191_v52 = vld [vmem:[%s2232_s0] ss:$12 sps:$4 sm:$0xff]  }
  0x49   :  { %691 = vmatpush1.bf16.msra.mxu1 %v1786_v12  ;;  %714 = vmatprep.mubr.bf16.mxu1 %v1845_v33  ;;  %v1837_v35 = vld [vmem:[#allocation2 + $0x2c0] ss:$16 sps:$4 sm:$0xff]   ;;  %v1808_v36 = vld [vmem:[#allocation2 + $0x144] ss:$16 sps:$4 sm:$0xff]  }
  0x4a   :  { %692 = vmatprep.subr.bf16.mxu1 %v1787_v15  ;;  %732 = vmatpush1.bf16.msra.mxu0 %v1819_v23  ;;  %v1841_v37 = vld [vmem:[#allocation2 + $0x2e4] ss:$16 sps:$4 sm:$0xff]   ;;  %v1810_v38 = vld [vmem:[#allocation2 + $0x140] ss:$16 sps:$4 sm:$0xff]  }
  0x4b   :  { %733 = vmatprep.subr.bf16.mxu0 %v1823_v24  ;;  %v1846_v39 = vld [vmem:[#allocation2 + $0x2e0] ss:$16 sps:$4 sm:$0xff]   ;;  %v1814_v40 = vld [vmem:[#allocation2 + $0x164] ss:$16 sps:$4 sm:$0xff]   ;;  %v1877_v24 = vld [vmem:[#allocation2 + $0x12c] ss:$16 sps:$4 sm:$0xff]  }
  0x4c   :  { %v1816_v42 = vld [vmem:[#allocation2 + $0x160] ss:$16 sps:$4 sm:$0xff]   ;;  %v1820_v43 = vld [vmem:[#allocation2 + $0x184] ss:$16 sps:$4 sm:$0xff]  }
  0x4d   :  { %693 = vmatpush1.bf16.msra.mxu1 %v1789_v16  ;;  %v1822_v44 = vld [vmem:[#allocation2 + $0x180] ss:$16 sps:$4 sm:$0xff]   ;;  %v1826_v45 = vld [vmem:[#allocation2 + $0x1a4] ss:$16 sps:$4 sm:$0xff]   ;;  %v1871_v16 = vld [vmem:[#allocation2 + $0xec] ss:$16 sps:$4 sm:$0xff]  }
  0x4e   :  { %694 = vmatprep.subr.bf16.mxu1 %v1790_v18  ;;  %734 = vmatpush1.bf16.msra.mxu0 %v1825_v27  ;;  %v1828_v46 = vld [vmem:[#allocation2 + $0x1a0] ss:$16 sps:$4 sm:$0xff]   ;;  %v1832_v47 = vld [vmem:[#allocation2 + $0x1c4] ss:$16 sps:$4 sm:$0xff]   ;;  %v1869_v18 = vld [vmem:[#allocation2 + $0xe8] ss:$16 sps:$4 sm:$0xff]  }
  0x4f   :  { %735 = vmatprep.subr.bf16.mxu0 %v1829_v28  ;;  %v1834_v48 = vld [vmem:[#allocation2 + $0x1c0] ss:$16 sps:$4 sm:$0xff]   ;;  %v1838_v49 = vld [vmem:[#allocation2 + $0x1e4] ss:$16 sps:$4 sm:$0xff]   ;;  %v1880_v28 = vld [vmem:[#allocation2 + $0x14c] ss:$16 sps:$4 sm:$0xff]  }
  0x50   :  { %v1840_v50 = vld [vmem:[#allocation2 + $0x1e0] ss:$16 sps:$4 sm:$0xff]   ;;  %v1922_v57 = vld [vmem:[#allocation4 + $0x4] ss:$8 sps:$4 sm:$0xff]   ;;  %v1925_v59 = vld [vmem:[#allocation4 + $0x14] ss:$8 sps:$4 sm:$0xff]  }
  0x51   :  { %695 = vmatpush1.bf16.msra.mxu1 %v1792_v21  ;;  %v1920_v56 = vld [vmem:[#allocation4] ss:$8 sps:$4 sm:$0xff]   ;;  %v1923_v60 = vld [vmem:[#allocation4 + $0x10] ss:$8 sps:$4 sm:$0xff]   ;;  %v1928_v62 = vld [vmem:[#allocation4 + $0x24] ss:$8 sps:$4 sm:$0xff]  }
  0x52   :  { %696 = vmatprep.subr.bf16.mxu1 %v1793_v22  ;;  %736 = vmatpush1.bf16.msra.mxu0 %v1831_v31  ;;  %v1926_v1 = vld [vmem:[#allocation4 + $0x20] ss:$8 sps:$4 sm:$0xff]   ;;  %v1931_v3 = vld [vmem:[#allocation4 + $0x34] ss:$8 sps:$4 sm:$0xff]   ;;  %v1929_v5 = vld [vmem:[#allocation4 + $0x30] ss:$8 sps:$4 sm:$0xff]  }
  0x53   :  { %737 = vmatprep.subr.bf16.mxu0 %v1835_v32  ;;  %v1934_v7 = vld [vmem:[#allocation4 + $0x44] ss:$8 sps:$4 sm:$0xff]   ;;  %v1932_v9 = vld [vmem:[#allocation4 + $0x40] ss:$8 sps:$4 sm:$0xff]   ;;  %v1937_v12 = vld [vmem:[#allocation4 + $0x54] ss:$8 sps:$4 sm:$0xff]  }
  0x54   :  { %v1935_v13 = vld [vmem:[#allocation4 + $0x50] ss:$8 sps:$4 sm:$0xff]   ;;  %v1940_v15 = vld [vmem:[#allocation4 + $0x64] ss:$8 sps:$4 sm:$0xff]   ;;  %v1938_v17 = vld [vmem:[#allocation4 + $0x60] ss:$8 sps:$4 sm:$0xff]  }
  0x55   :  { %697 = vmatpush1.bf16.msra.mxu1 %v1795_v25  ;;  %v1943_v19 = vld [vmem:[#allocation4 + $0x74] ss:$8 sps:$4 sm:$0xff]   ;;  %v1941_v21 = vld [vmem:[#allocation4 + $0x70] ss:$8 sps:$4 sm:$0xff]   ;;  %v1946_v23 = vld [vmem:[#allocation4 + $0x84] ss:$8 sps:$4 sm:$0xff]  }
  0x56   :  { %698 = vmatprep.subr.bf16.mxu1 %v1796_v26  ;;  %738 = vmatpush1.bf16.msra.mxu0 %v1837_v35  ;;  %v1872_v22 = vld [vmem:[#allocation2 + $0x108] ss:$16 sps:$4 sm:$0xff]   ;;  %v1949_v27 = vld [vmem:[#allocation4 + $0x94] ss:$8 sps:$4 sm:$0xff]   ;;  %v1952_v31 = vld [vmem:[#allocation4 + $0xa4] ss:$8 sps:$4 sm:$0xff]  }
  0x57   :  { %739 = vmatprep.subr.bf16.mxu0 %v1841_v37  ;;  %v1944_v25 = vld [vmem:[#allocation4 + $0x80] ss:$8 sps:$4 sm:$0xff]   ;;  %v1883_v32 = vld [vmem:[#allocation2 + $0x16c] ss:$16 sps:$4 sm:$0xff]   ;;  %v1953_v37 = vld [vmem:[#allocation4 + $0xb0] ss:$8 sps:$4 sm:$0xff]  }
  0x58   :  { %v1875_v26 = vld [vmem:[#allocation2 + $0x128] ss:$16 sps:$4 sm:$0xff]   ;;  %v1955_v35 = vld [vmem:[#allocation4 + $0xb4] ss:$8 sps:$4 sm:$0xff]  }
  0x59   :  { %699 = vmatpush1.bf16.msra.mxu1 %v1798_v29  ;;  %v1947_v29 = vld [vmem:[#allocation4 + $0x90] ss:$8 sps:$4 sm:$0xff]  }
  0x5a   :  { %700 = vmatprep.subr.bf16.mxu1 %v1802_v30  ;;  %740 = vmatpush1.bf16.msra.mxu0 %v1846_v39  ;;  %v1878_v30 = vld [vmem:[#allocation2 + $0x148] ss:$16 sps:$4 sm:$0xff]   ;;  %v1958_v39 = vld [vmem:[#allocation4 + $0xc4] ss:$8 sps:$4 sm:$0xff]  }
  0x5b   :  { %1261 = vmatprep.subr.bf16.mxu0 %v1922_v57  ;;  %v1910_v57 = vld [vmem:[#allocation2 + $0x28c] ss:$16 sps:$4 sm:$0xff]  }
  0x5d   :  { %701 = vmatpush1.bf16.msra.mxu1 %v1804_v34  ;;  %758 = vmatmul.mubr.bf16.vlgmr.msra.gmra.mrb[0].mxu0 %v2185_v41  ;;  %v1881_v34 = vld [vmem:[#allocation2 + $0x168] ss:$16 sps:$4 sm:$0xff]  }
  0x5e   :  { %702 = vmatprep.subr.bf16.mxu1 %v1808_v36  ;;  %1262 = vmatpush1.bf16.msra.mxu0 %v1920_v56  ;;  %v1886_v36 = vld [vmem:[#allocation2 + $0x18c] ss:$16 sps:$4 sm:$0xff]   ;;  %v1905_v56 = vld [vmem:[#allocation2 + $0x268] ss:$16 sps:$4 sm:$0xff]  }
  0x5f   :  { %1263 = vmatprep.subr.bf16.mxu0 %v1925_v59  ;;  %v1913_v59 = vld [vmem:[#allocation2 + $0x2ac] ss:$16 sps:$4 sm:$0xff]  }
  0x61   :  { %703 = vmatpush1.bf16.msra.mxu1 %v1810_v38  ;;  %v1884_v38 = vld [vmem:[#allocation2 + $0x188] ss:$16 sps:$4 sm:$0xff]  }
  0x62   :  { %704 = vmatprep.subr.bf16.mxu1 %v1814_v40  ;;  %1264 = vmatpush1.bf16.msra.mxu0 %v1923_v60  ;;  %v1889_v40 = vld [vmem:[#allocation2 + $0x1ac] ss:$16 sps:$4 sm:$0xff]  }
  0x63   :  { %1265 = vmatprep.subr.bf16.mxu0 %v1928_v62  ;;  %v1916_v60 = vld [vmem:[#allocation2 + $0x2cc] ss:$16 sps:$4 sm:$0xff]   ;;  %v1914_v62 = vld [vmem:[#allocation2 + $0x2c8] ss:$16 sps:$4 sm:$0xff]  }
  0x65   :  { %705 = vmatpush1.bf16.msra.mxu1 %v1816_v42  ;;  %v1956_v42 = vld [vmem:[#allocation4 + $0xc0] ss:$8 sps:$4 sm:$0xff]  }
  0x66   :  { %706 = vmatprep.subr.bf16.mxu1 %v1820_v43  ;;  %1266 = vmatpush1.bf16.msra.mxu0 %v1926_v1  ;;  %v1887_v43 = vld [vmem:[#allocation2 + $0x1a8] ss:$16 sps:$4 sm:$0xff]   ;;  %v1964_v1 = vld [vmem:[#allocation4 + $0xe4] ss:$8 sps:$4 sm:$0xff]  }
  0x67   :  { %1267 = vmatprep.subr.bf16.mxu0 %v1931_v3  ;;  %v1917_v3 = vld [vmem:[#allocation2 + $0x2e8] ss:$16 sps:$4 sm:$0xff]  }
  0x69   :  { %707 = vmatpush1.bf16.msra.mxu1 %v1822_v44  ;;  %v1892_v44 = vld [vmem:[#allocation2 + $0x1cc] ss:$16 sps:$4 sm:$0xff]  }
  0x6a   :  { %708 = vmatprep.subr.bf16.mxu1 %v1826_v45  ;;  %1268 = vmatpush1.bf16.msra.mxu0 %v1929_v5  ;;  %v1890_v45 = vld [vmem:[#allocation2 + $0x1c8] ss:$16 sps:$4 sm:$0xff]  }
  0x6b   :  { %1269 = vmatprep.subr.bf16.mxu0 %v1934_v7  ;;  %v1965_v5 = vld [vmem:[#allocation4 + $0xf0] ss:$8 sps:$4 sm:$0xff]   ;;  %v2016_v7 = vld [vmem:[#allocation6 + $0x40] sm:$0xff]  }
  0x6d   :  { %709 = vmatpush1.bf16.msra.mxu1 %v1828_v46  ;;  %v1895_v46 = vld [vmem:[#allocation2 + $0x1ec] ss:$16 sps:$4 sm:$0xff]  }
  0x6e   :  { %710 = vmatprep.subr.bf16.mxu1 %v1832_v47  ;;  %1270 = vmatpush1.bf16.msra.mxu0 %v1932_v9  ;;  %v1893_v47 = vld [vmem:[#allocation2 + $0x1e8] ss:$16 sps:$4 sm:$0xff]  }
  0x6f   :  { %1271 = vmatprep.subr.bf16.mxu0 %v1937_v12  ;;  %v2018_v9 = vld [vmem:[#allocation6 + $0x48] sm:$0xff]  }
  0x71   :  { %711 = vmatpush1.bf16.msra.mxu1 %v1834_v48  ;;  %v1898_v48 = vld [vmem:[#allocation2 + $0x20c] ss:$16 sps:$4 sm:$0xff]  }
  0x72   :  { %712 = vmatprep.subr.bf16.mxu1 %v1838_v49  ;;  %1272 = vmatpush1.bf16.msra.mxu0 %v1935_v13  ;;  %v1896_v49 = vld [vmem:[#allocation2 + $0x208] ss:$16 sps:$4 sm:$0xff]  }
  0x73   :  { %1273 = vmatprep.subr.bf16.mxu0 %v1940_v15  ;;  %v2019_v13 = vld [vmem:[#allocation6 + $0x8] sm:$0xff]   ;;  %v2020_v15 = vld [vmem:[#allocation6 + $0x50] sm:$0xff]  }
  0x75   :  { %713 = vmatpush1.bf16.msra.mxu1 %v1840_v50  ;;  %v1901_v50 = vld [vmem:[#allocation2 + $0x22c] ss:$16 sps:$4 sm:$0xff]  }
  0x76   :  { %768 = vmatprep.subr.bf16.mxu1 %v1849_v51  ;;  %1274 = vmatpush1.bf16.msra.mxu0 %v1938_v17  ;;  %v1899_v51 = vld [vmem:[#allocation2 + $0x228] ss:$16 sps:$4 sm:$0xff]   ;;  %v2021_v17 = vld [vmem:[#allocation6 + $0x10] sm:$0xff]  }
  0x77   :  { %1275 = vmatprep.subr.bf16.mxu0 %v1943_v19  ;;  %v2023_v19 = vld [vmem:[#allocation6 + $0x18] sm:$0xff]  }
  0x78   :  { %715 = vmatmul.mubr.bf16.vlgmr.msra.gmra.mrb[0].mxu1 %v2191_v52 }
  0x79   :  { %769 = vmatpush1.bf16.msra.mxu1 %v1847_v53  ;;  %800 = vmatprep.mubr.bf16.mxu1 %v1845_v33  ;;  %v1950_v33 = vld [vmem:[#allocation4 + $0xa0] ss:$8 sps:$4 sm:$0xff]   ;;  %v1904_v53 = vld [vmem:[#allocation2 + $0x24c] ss:$16 sps:$4 sm:$0xff]  }
  0x7a   :  { %770 = vmatprep.subr.bf16.mxu1 %v1853_v54  ;;  %1276 = vmatpush1.bf16.msra.mxu0 %v1941_v21  ;;  %v1902_v54 = vld [vmem:[#allocation2 + $0x248] ss:$16 sps:$4 sm:$0xff]  }
  0x7b   :  { %1277 = vmatprep.subr.bf16.mxu0 %v1946_v23 }
  0x7d   :  { %771 = vmatpush1.bf16.msra.mxu1 %v1851_v55  ;;  %v1907_v55 = vld [vmem:[#allocation2 + $0x26c] ss:$16 sps:$4 sm:$0xff]  }
  0x7e   :  { %772 = vmatprep.subr.bf16.mxu1 %v1856_v58  ;;  %1278 = vmatpush1.bf16.msra.mxu0 %v1944_v25  ;;  %v1908_v58 = vld [vmem:[#allocation2 + $0x288] ss:$16 sps:$4 sm:$0xff]  }
  0x7f   :  { %1279 = vmatprep.subr.bf16.mxu0 %v1949_v27  ;;  %v2026_v25 = vld [vmem:[#allocation6 + $0x68] sm:$0xff]  }
  0x81   :  { %773 = vmatpush1.bf16.msra.mxu1 %v1854_v61  ;;  %v1961_v61 = vld [vmem:[#allocation4 + $0xd4] ss:$8 sps:$4 sm:$0xff]  }
  0x82   :  { %774 = vmatprep.subr.bf16.mxu1 %v1859_v63  ;;  %1280 = vmatpush1.bf16.msra.mxu0 %v1947_v29  ;;  %v1919_v63 = vld [vmem:[#allocation2 + $0x2ec] ss:$16 sps:$4 sm:$0xff]  }
  0x83   :  { %1281 = vmatprep.subr.bf16.mxu0 %v1952_v31 }
  0x85   :  { %775 = vmatpush1.bf16.msra.mxu1 %v1857_v2  ;;  %v1962_v2 = vld [vmem:[#allocation4 + $0xe0] ss:$8 sps:$4 sm:$0xff]  }
  0x86   :  { %776 = vmatprep.subr.bf16.mxu1 %v1862_v4  ;;  %1282 = vmatpush1.bf16.msra.mxu0 %v1950_v33  ;;  %v1967_v4 = vld [vmem:[#allocation4 + $0xf4] ss:$8 sps:$4 sm:$0xff]  }
  0x87   :  { %1283 = vmatprep.subr.bf16.mxu0 %v1955_v35 }
  0x89   :  { %777 = vmatpush1.bf16.msra.mxu1 %v1860_v6  ;;  %v1970_v6 = vld [vmem:[#allocation4 + $0x104] ss:$8 sps:$4 sm:$0xff]  }
  0x8a   :  { %778 = vmatprep.subr.bf16.mxu1 %v1865_v8  ;;  %1284 = vmatpush1.bf16.msra.mxu0 %v1953_v37  ;;  %v2017_v8 = vld [vmem:[#allocation6] sm:$0xff]  }
  0x8b   :  { %1285 = vmatprep.subr.bf16.mxu0 %v1958_v39 }
  0x8d   :  { %779 = vmatpush1.bf16.msra.mxu1 %v1863_v10 }
  0x8e   :  { %780 = vmatprep.subr.bf16.mxu1 %v1868_v11  ;;  %1286 = vmatpush1.bf16.msra.mxu0 %v1956_v42 }
  0x8f   :  { %1287 = vmatprep.subr.bf16.mxu0 %v1961_v61  ;;  %v1989_v61 = vld [vmem:[#allocation4 + $0x170] ss:$8 sps:$4 sm:$0xff]  }
  0x91   :  { %781 = vmatpush1.bf16.msra.mxu1 %v1866_v14 }
  0x92   :  { %782 = vmatprep.subr.bf16.mxu1 %v1871_v16  ;;  %v166_v16 = vlaneseq }
  0x95   :  { %783 = vmatpush1.bf16.msra.mxu1 %v1869_v18  ;;  %v2022_v18 = vld [vmem:[#allocation6 + $0x58] sm:$0xff]  }
  0x96   :  { %784 = vmatprep.subr.bf16.mxu1 %v1874_v20  ;;  %v2024_v20 = vld [vmem:[#allocation6 + $0x60] sm:$0xff]  }
  0x99   :  { %785 = vmatpush1.bf16.msra.mxu1 %v1872_v22  ;;  %v2203_v22 = vld [vmem:[%s2236_s4] sm:$0xf] }
  0x9a   :  { %786 = vmatprep.subr.bf16.mxu1 %v1877_v24  ;;  %v2025_v24 = vld [vmem:[#allocation6 + $0x20] sm:$0xff]  }
  0x9d   :  { %787 = vmatpush1.bf16.msra.mxu1 %v1875_v26 }
  0x9e   :  { %788 = vmatprep.subr.bf16.mxu1 %v1880_v28 }
  0xa1   :  { %789 = vmatpush1.bf16.msra.mxu1 %v1878_v30 }
  0xa2   :  { %790 = vmatprep.subr.bf16.mxu1 %v1883_v32 }
  0xa5   :  { %791 = vmatpush1.bf16.msra.mxu1 %v1881_v34 }
  0xa6   :  { %792 = vmatprep.subr.bf16.mxu1 %v1886_v36 }
  0xa9   :  { %793 = vmatpush1.bf16.msra.mxu1 %v1884_v38 }
  0xaa   :  { %794 = vmatprep.subr.bf16.mxu1 %v1889_v40 }
  0xad   :  { %795 = vmatpush1.bf16.msra.mxu1 %v1887_v43 }
  0xae   :  { %796 = vmatprep.subr.bf16.mxu1 %v1892_v44 }
  0xb1   :  { %797 = vmatpush1.bf16.msra.mxu1 %v1890_v45 }
  0xb2   :  { %798 = vmatprep.subr.bf16.mxu1 %v1895_v46 }
  0xb5   :  { %799 = vmatpush1.bf16.msra.mxu1 %v1893_v47  ;;  %v1968_v47 = vld [vmem:[#allocation4 + $0x100] ss:$8 sps:$4 sm:$0xff]  }
  0xb6   :  { %811 = vmatprep.subr.bf16.mxu1 %v1898_v48  ;;  %v1973_v48 = vld [vmem:[#allocation4 + $0x114] ss:$8 sps:$4 sm:$0xff]  }
  0xb8   :  { %801 = vmatmul.mubr.bf16.vlgmr.msra.gmra.mrb[4].mxu1 %v2191_v52  ;;  %v1911_v52 = vld [vmem:[#allocation2 + $0x2a8] ss:$16 sps:$4 sm:$0xff]  }
  0xb9   :  { %812 = vmatpush1.bf16.msra.mxu1 %v1896_v49  ;;  %843 = vmatprep.mubr.bf16.mxu1 %v2111_v0  ;;  %v1959_v0 = vld [vmem:[#allocation4 + $0xd0] ss:$8 sps:$4 sm:$0xff]  }
  0xba   :  { %813 = vmatprep.subr.bf16.mxu1 %v1901_v50  ;;  %1288 = vmatpush1.bf16.msra.mxu0 %v1959_v0  ;;  %v1971_v49 = vld [vmem:[#allocation4 + $0x110] ss:$8 sps:$4 sm:$0xff]   ;;  %v1976_v50 = vld [vmem:[#allocation4 + $0x124] ss:$8 sps:$4 sm:$0xff]  }
  0xbb   :  { %1289 = vmatprep.subr.bf16.mxu0 %v1964_v1  ;;  %v1994_v0 = vld [vmem:[#allocation4 + $0x184] ss:$8 sps:$4 sm:$0xff]   ;;  %v1995_v1 = vld [vmem:[#allocation4 + $0x190] ss:$8 sps:$4 sm:$0xff]  }
  0xbd   :  { %814 = vmatpush1.bf16.msra.mxu1 %v1899_v51  ;;  %v1974_v51 = vld [vmem:[#allocation4 + $0x120] ss:$8 sps:$4 sm:$0xff]  }
  0xbe   :  { %815 = vmatprep.subr.bf16.mxu1 %v1904_v53  ;;  %1290 = vmatpush1.bf16.msra.mxu0 %v1962_v2  ;;  %v1979_v53 = vld [vmem:[#allocation4 + $0x134] ss:$8 sps:$4 sm:$0xff]   ;;  %v2000_v2 = vld [vmem:[#allocation4 + $0x1a4] ss:$8 sps:$4 sm:$0xff]  }
  0xbf   :  { %1291 = vmatprep.subr.bf16.mxu0 %v1967_v4  ;;  %v2003_v4 = vld [vmem:[#allocation4 + $0x1b4] ss:$8 sps:$4 sm:$0xff]  }
  0xc1   :  { %816 = vmatpush1.bf16.msra.mxu1 %v1902_v54  ;;  %v1977_v54 = vld [vmem:[#allocation4 + $0x130] ss:$8 sps:$4 sm:$0xff]  }
  0xc2   :  { %817 = vmatprep.subr.bf16.mxu1 %v1907_v55  ;;  %1292 = vmatpush1.bf16.msra.mxu0 %v1965_v5  ;;  %v1982_v55 = vld [vmem:[#allocation4 + $0x144] ss:$8 sps:$4 sm:$0xff]   ;;  %v2001_v5 = vld [vmem:[#allocation4 + $0x1b0] ss:$8 sps:$4 sm:$0xff]  }
  0xc3   :  { %1304 = vmatprep.subr.bf16.mxu0 %v1970_v6  ;;  %v2006_v6 = vld [vmem:[#allocation4 + $0x1c4] ss:$8 sps:$4 sm:$0xff]  }
  0xc5   :  { %818 = vmatpush1.bf16.msra.mxu1 %v1905_v56  ;;  %v1980_v56 = vld [vmem:[#allocation4 + $0x140] ss:$8 sps:$4 sm:$0xff]  }
  0xc6   :  { %819 = vmatprep.subr.bf16.mxu1 %v1910_v57  ;;  %v1985_v57 = vld [vmem:[#allocation4 + $0x154] ss:$8 sps:$4 sm:$0xff]  }
  0xc9   :  { %820 = vmatpush1.bf16.msra.mxu1 %v1908_v58  ;;  %v1983_v58 = vld [vmem:[#allocation4 + $0x150] ss:$8 sps:$4 sm:$0xff]  }
  0xca   :  { %821 = vmatprep.subr.bf16.mxu1 %v1913_v59  ;;  %v1988_v59 = vld [vmem:[#allocation4 + $0x164] ss:$8 sps:$4 sm:$0xff]  }
  0xcd   :  { %822 = vmatpush1.bf16.msra.mxu1 %v1911_v52  ;;  %v1986_v52 = vld [vmem:[#allocation4 + $0x160] ss:$8 sps:$4 sm:$0xff]  }
  0xce   :  { %823 = vmatprep.subr.bf16.mxu1 %v1916_v60  ;;  %v1991_v60 = vld [vmem:[#allocation4 + $0x174] ss:$8 sps:$4 sm:$0xff]  }
  0xd1   :  { %824 = vmatpush1.bf16.msra.mxu1 %v1914_v62  ;;  %v1992_v62 = vld [vmem:[#allocation4 + $0x180] ss:$8 sps:$4 sm:$0xff]  }
  0xd2   :  { %825 = vmatprep.subr.bf16.mxu1 %v1919_v63  ;;  %v1997_v63 = vld [vmem:[#allocation4 + $0x194] ss:$8 sps:$4 sm:$0xff]  }
  0xd5   :  { %826 = vmatpush1.bf16.msra.mxu1 %v1917_v3  ;;  %v1998_v3 = vld [vmem:[#allocation4 + $0x1a0] ss:$8 sps:$4 sm:$0xff]  }
  0xd6   :  { %1716 = vmatprep.subr.bf16.mxu1 %v2016_v7  ;;  %v2004_v7 = vld [vmem:[#allocation4 + $0x1c0] ss:$8 sps:$4 sm:$0xff]  }
  0xd8   :  { %844 = vmatmul.mubr.bf16.vlgmr.msra.gmra.mrb[4].mxu1 %v2185_v41  ;;  %v2197_v41 = vshrl.u32 %v166_v16, 7 }
  0xd9   :  { %1717 = vmatpush3.bf16.msra.mxu1 %v2017_v8  ;;  %v2009_v8 = vld [vmem:[#allocation4 + $0x1d4] ss:$8 sps:$4 sm:$0xff]  }
  0xda   :  { %1718 = vmatprep.subr.bf16.mxu1 %v2018_v9  ;;  %v168_v21 = vsub.s32 0, %v2197_v41  ;;  %v172_v23 = vsub.s32 1, %v2197_v41  ;;  %v2007_v9 = vld [vmem:[#allocation4 + $0x1d0] ss:$8 sps:$4 sm:$0xff]  }
  0xdc   :  { %v169_v26 = vrot.slane %v2203_v22, %v168_v21  ;;  %v173_v27 = vrot.slane %v2203_v22, %v172_v23 }
  0xdd   :  { %1719 = vmatpush3.bf16.msra.mxu1 %v2019_v13  ;;  %v2013_v13 = vld [vmem:[#allocation4 + $0x1f0] ss:$8 sps:$4 sm:$0xff]  }
  0xde   :  { %1720 = vmatprep.subr.bf16.mxu1 %v2020_v15  ;;  %v180_v15 = vsub.s32 3, %v2197_v41 }
  0xe1   :  { %1721 = vmatpush3.bf16.msra.mxu1 %v2021_v17  ;;  %v181_v17 = vrot.slane %v2203_v22, %v180_v15 }
  0xe2   :  { %1722 = vmatprep.subr.bf16.mxu1 %v2022_v18 }
  0xe5   :  { %1723 = vmatpush3.bf16.msra.mxu1 %v2023_v19 }
  0xe6   :  { %1724 = vmatprep.subr.bf16.mxu1 %v2024_v20 }
  0xe9   :  { %1725 = vmatpush3.bf16.msra.mxu1 %v2025_v24 }
  0xea   :  { %1726 = vmatprep.subr.bf16.mxu1 %v2026_v25 }
 0x130   :  { %v759_v10 = vpop.f32.mrb[0].mxu0 }
 0x131   :  { %v761_v11 = vpop.f32.mrb[1].mxu0 }
 0x132   :  { %v763_v12 = vpop.f32.mrb[2].mxu0 }
 0x133   :  { %v765_v14 = vpop.f32.mrb[3].mxu0 }
 0x14b   :  { %v716_v28 = vpop.f32.mrb[0].mxu1 }
 0x14c   :  { %v717_v29 = vadd.f32 %v716_v28, %v169_v26  ;;  %v718_v30 = vpop.f32.mrb[1].mxu1 }
 0x14d   :  { %v719_v31 = vadd.f32 %v718_v30, %v173_v27  ;;  %v720_v32 = vpop.f32.mrb[2].mxu1 }
 0x14e   :  { %v721_v33 = vadd.f32 %v720_v32, %v169_v26  ;;  %v760_v34 = vadd.f32 %v759_v10, %v717_v29  ;;  %v722_v35 = vpop.f32.mrb[3].mxu1  ;;  %v2012_v10 = vld [vmem:[#allocation4 + $0x1e4] ss:$8 sps:$4 sm:$0xff]  }
 0x14f   :  { %v723_v36 = vadd.f32 %v722_v35, %v173_v27  ;;  %v762_v37 = vadd.f32 %v761_v11, %v719_v31  ;;  %v2010_v11 = vld [vmem:[#allocation4 + $0x1e0] ss:$8 sps:$4 sm:$0xff]  }
 0x150   :  { %v854_v38 = vmax.f32 %v760_v34, 0.0  ;;  %v764_v39 = vadd.f32 %v763_v12, %v721_v33  ;;  %v2015_v12 = vld [vmem:[#allocation4 + $0x1f4] ss:$8 sps:$4 sm:$0xff]   ;;  %v2027_v35 = vld [vmem:[#allocation6 + $0x28] sm:$0xff]  }
 0x151   :  { %v766_v40 = vadd.f32 %v765_v14, %v723_v36  ;;  %v855_v43 = vmax.f32 %v762_v37, 0.0  ;;  %v176_v14 = vsub.s32 2, %v2197_v41  ;;  %1727 = vmatpush3.bf16.msra.mxu1 %v2027_v35  ;;  %v2028_v36 = vld [vmem:[#allocation6 + $0x70] sm:$0xff]   ;;  %v2030_v37 = vld [vmem:[#allocation6 + $0x78] sm:$0xff]   ;;  %v1699_v41 = vld [vmem:[%s2236_s4 + $0x6] ss:$0 sm:$0xff] }
 0x152   :  { %v858_v42 = vmax.f32 %v764_v39, 0.0  ;;  %1728 = vmatprep.subr.bf16.mxu1 %v2028_v36  ;;  %v63_v39 = vld [vmem:[%s2236_s4 + $0x4] sm:$0x3] }
 0x153   :  { %v859_v44 = vmax.f32 %v766_v40, 0.0  ;;  %v177_v16 = vrot.slane %v2203_v22, %v176_v14  ;;  %v2029_v22 = vld [vmem:[#allocation6 + $0x30] sm:$0xff]   ;;  %v934_v40 = vrot.slane %v63_v39, %v168_v21 }
 0x154   :  { %v862_v45 = vpack.c.bf16 %v858_v42, %v854_v38  ;;  %v2031_v38 = vld [vmem:[#allocation6 + $0x38] sm:$0xff]   ;;  %v938_v42 = vrot.slane %v63_v39, %v172_v23 }
 0x155   :  { %v863_v46 = vpack.c.bf16 %v859_v44, %v855_v43  ;;  %1729 = vmatpush3.bf16.msra.mxu1 %v2029_v22 }
 0x156   :  { %1730 = vmatprep.subr.bf16.mxu1 %v2030_v37 }
 0x157   :  { %1293 = vmatprep.mubr.bf16.mxu0 %v863_v46 }
 0x158   :  { %1294 = vmatmul.mubr.bf16.vlgmr.msra.gmra.mrb[4].mxu0 %v862_v45 }
 0x159   :  { %1305 = vmatpush1.bf16.msra.mxu0 %v1968_v47  ;;  %1731 = vmatpush3.bf16.msra.mxu1 %v2031_v38 }
 0x15a   :  { %1306 = vmatprep.subr.bf16.mxu0 %v1973_v48 }
 0x15d   :  { %1307 = vmatpush1.bf16.msra.mxu0 %v1971_v49 }
 0x15e   :  { %1308 = vmatprep.subr.bf16.mxu0 %v1976_v50 }
 0x161   :  { %1309 = vmatpush1.bf16.msra.mxu0 %v1974_v51 }
 0x162   :  { %1310 = vmatprep.subr.bf16.mxu0 %v1979_v53 }
 0x165   :  { %1311 = vmatpush1.bf16.msra.mxu0 %v1977_v54 }
 0x166   :  { %1312 = vmatprep.subr.bf16.mxu0 %v1982_v55 }
 0x169   :  { %1313 = vmatpush1.bf16.msra.mxu0 %v1980_v56 }
 0x16a   :  { %1314 = vmatprep.subr.bf16.mxu0 %v1985_v57 }
 0x16d   :  { %1315 = vmatpush1.bf16.msra.mxu0 %v1983_v58 }
 0x16e   :  { %1316 = vmatprep.subr.bf16.mxu0 %v1988_v59 }
 0x171   :  { %1317 = vmatpush1.bf16.msra.mxu0 %v1986_v52 }
 0x172   :  { %1318 = vmatprep.subr.bf16.mxu0 %v1991_v60 }
 0x175   :  { %1319 = vmatpush1.bf16.msra.mxu0 %v1989_v61 }
 0x176   :  { %1320 = vmatprep.subr.bf16.mxu0 %v1994_v0 }
 0x179   :  { %1321 = vmatpush1.bf16.msra.mxu0 %v1992_v62 }
 0x17a   :  { %1322 = vmatprep.subr.bf16.mxu0 %v1997_v63 }
 0x17d   :  { %1323 = vmatpush1.bf16.msra.mxu0 %v1995_v1 }
 0x17e   :  { %1324 = vmatprep.subr.bf16.mxu0 %v2000_v2 }
 0x181   :  { %1325 = vmatpush1.bf16.msra.mxu0 %v1998_v3 }
 0x182   :  { %1326 = vmatprep.subr.bf16.mxu0 %v2003_v4 }
 0x185   :  { %1327 = vmatpush1.bf16.msra.mxu0 %v2001_v5 }
 0x186   :  { %1328 = vmatprep.subr.bf16.mxu0 %v2006_v6 }
 0x189   :  { %1329 = vmatpush1.bf16.msra.mxu0 %v2004_v7 }
 0x18a   :  { %1330 = vmatprep.subr.bf16.mxu0 %v2009_v8 }
 0x18d   :  { %1331 = vmatpush1.bf16.msra.mxu0 %v2007_v9 }
 0x18e   :  { %1332 = vmatprep.subr.bf16.mxu0 %v2012_v10 }
 0x191   :  { %1333 = vmatpush1.bf16.msra.mxu0 %v2010_v11 }
 0x192   :  { %1334 = vmatprep.subr.bf16.mxu0 %v2015_v12 }
 0x195   :  { %1335 = vmatpush1.bf16.msra.mxu0 %v2013_v13 }
 0x1ab   :  { %v845_v18 = vpop.f32.mrb[4].mxu1 }
 0x1ac   :  { %v1746_v19 = vadd.f32 %v845_v18, %v177_v16  ;;  %v847_v20 = vpop.f32.mrb[5].mxu1 }
 0x1ad   :  { %v1747_v24 = vadd.f32 %v847_v20, %v181_v17  ;;  %v849_v25 = vpop.f32.mrb[6].mxu1 }
 0x1ae   :  { %v1748_v26 = vadd.f32 %v849_v25, %v177_v16  ;;  %v851_v27 = vpop.f32.mrb[7].mxu1  ;;  %v856_v29 = vmax.f32 %v1746_v19, 0.0 }
 0x1af   :  { %v1749_v28 = vadd.f32 %v851_v27, %v181_v17  ;;  %v857_v31 = vmax.f32 %v1747_v24, 0.0 }
 0x1b0   :  { %v860_v30 = vmax.f32 %v1748_v26, 0.0 }
 0x1b1   :  { %v861_v32 = vmax.f32 %v1749_v28, 0.0 }
 0x1b2   :  { %v864_v33 = vpack.c.bf16 %v860_v30, %v856_v29 }
 0x1b3   :  { %v865_v34 = vpack.c.bf16 %v861_v32, %v857_v31 }
 0x1b5   :  { %1336 = vmatprep.mubr.bf16.mxu0 %v865_v34 }
 0x1b6   :  { %1337 = vmatmul.mubr.bf16.vlgmr.msra.gmra.mrb[4].mxu0 %v864_v33 }
 0x289   :  { %v1338_v43 = vpop.f32.mrb[4].mxu0 }
 0x28a   :  { %v1750_v44 = vadd.f32 %v1338_v43, %v934_v40  ;;  %v1340_v45 = vpop.f32.mrb[5].mxu0 }
 0x28b   :  { %v1751_v46 = vadd.f32 %v1340_v45, %v938_v42  ;;  %v1342_v47 = vpop.f32.mrb[6].mxu0 }
 0x28c   :  { %v1752_v48 = vadd.f32 %v1342_v47, %v934_v40  ;;  %v1344_v49 = vpop.f32.mrb[7].mxu0  ;;  %v1347_v51 = vmax.f32 %v1750_v44, 0.0 }
 0x28d   :  { %v1753_v50 = vadd.f32 %v1344_v49, %v938_v42  ;;  %v1348_v54 = vmax.f32 %v1751_v46, 0.0 }
 0x28e   :  { %v1349_v53 = vmax.f32 %v1752_v48, 0.0 }
 0x28f   :  { %v1350_v55 = vmax.f32 %v1753_v50, 0.0 }
 0x290   :  { %v1351_v56 = vpack.c.bf16 %v1349_v53, %v1347_v51 }
 0x291   :  { %v1352_v57 = vpack.c.bf16 %v1350_v55, %v1348_v54 }
 0x293   :  { %1519 = vmatprep.mubr.bf16.mxu1 %v1352_v57 }
 0x294   :  { %1520 = vmatmul.mubr.bf16.vlgmr.msra.gmra.mrb[8].mxu1 %v1351_v56 }
 0x367   :  { %v1732_v21 = vpop.f32.mrb[8].mxu1 }
 0x368   :  { %v1733_v23 = vpop.f32.mrb[9].mxu1 }
 0x369   :  { %v1734_v58 = vadd.f32 %v1733_v23, %v1732_v21  ;;  %v1735_v59 = vpop.f32.mrb[10].mxu1 }
 0x36a   :  { %v1736_v52 = vpop.f32.mrb[11].mxu1 }
 0x36b   :  { %v1522_v60 = vadd.f32 %v1734_v58, %v1699_v41  ;;  %v1737_v61 = vadd.f32 %v1736_v52, %v1735_v59 }
 0x36d   :  { %1528 = vst [vmem:[%s2237_s5] sm:$0xff] %v1522_v60  ;;  %v1525_v0 = vadd.f32 %v1737_v61, %v1699_v41 }
 0x36f   :  { %1529 = vst [vmem:[%s2237_s5 + $0x8] sm:$0xff] %v1525_v0 }
 0x370   :  { %1534 = vsyncpa [#allocation3], 1 }
 0x371   :  { %1535 = vsyncpa [#allocation5], 1 }

</bundles_post_ra>
